<compile_context>
chip_gen: v7x
topology: tpu7x:2x2x1
jax: 0.10.0
libtpu: 0.0.40
codegen_flags: <defaults>
</compile_context>

<pallas_src>
import functools

import jax
import jax.numpy as jnp
from jax import lax
from jax.experimental import pallas as pl
from jax.experimental.pallas import tpu as pltpu

ALPHA = 0.25          # module default: alpha vector is [alpha, 1 - alpha]
GAMMA = 2             # module default
IGNORE_LABEL = 255.0

LANES = 128
SUBLANES = 8
MAX_BLOCK_ROWS = 2048   # 2048 x 128 x 4 B = 1 MiB per f32 input block (safe on v5e/v6e/v7x)
NUM_CORES = 2           # parallel grid axis (v7x megacore); harmless serial loop on 1-TC chips


def _focal_kernel(x_ref, t_ref, out_ref, *, block_rows, steps_per_core, n_valid):
    """Accumulate per-core partial sums {sum(BCE), sum(alpha), valid count} into out_ref."""
    c = pl.program_id(0)          # "parallel" axis (TensorCore split on v7x)
    s = pl.program_id(1)          # "arbitrary" reduction axis

    @pl.when(s == 0)
    def _init():
        out_ref[...] = jnp.zeros(out_ref.shape, jnp.float32)

    p = x_ref[...].astype(jnp.float32)
    t = t_ref[...].astype(jnp.float32)

    # Bounds mask for the ragged tail (partial last block / dummy core steps / wrapper tail
    # pad): keep only elements whose global flat index is < n_valid (static).
    base_row = (c * steps_per_core + s) * block_rows
    grow = base_row + lax.broadcasted_iota(jnp.int32, (block_rows, LANES), 0)
    full_rows = n_valid // LANES          # static
    rem = n_valid % LANES                 # static
    if rem == 0:
        in_bounds = grow < full_rows
    else:
        lane = lax.broadcasted_iota(jnp.int32, (block_rows, LANES), 1)
        in_bounds = (grow < full_rows) | ((grow == full_rows) & (lane < rem))

    valid = in_bounds & (t >= 0.0) & (t != IGNORE_LABEL)

    # Per-element binary cross entropy (PyTorch clamps log at -100).
    logp = jnp.maximum(jnp.log(p), -100.0)
    log1mp = jnp.maximum(jnp.log(1.0 - p), -100.0)
    bce = -(t * logp + (1.0 - t) * log1mp)
    bce = jnp.where(valid, bce, 0.0)

    # alpha gather: valid targets are 0/1 -> alpha[0] = ALPHA, alpha[1] = 1 - ALPHA.
    at = jnp.where(t > 0.5, 1.0 - ALPHA, ALPHA)
    at = jnp.where(valid, at, 0.0)
    cnt = valid.astype(jnp.float32)

    def fold(v):
        # (block_rows, 128) -> (8, 128): vreg-aligned partial sums, pure elementwise adds.
        return v.reshape(block_rows // SUBLANES, SUBLANES, LANES).sum(axis=0)

    out_ref[0, 0] += fold(bce)
    out_ref[0, 1] += fold(at)
    out_ref[0, 2] += fold(cnt)


def weighted_focal_loss(inputs, targets):
    """inputs: probabilities in (0,1), any shape (e.g. NCHW).
    targets: same shape, values {0, 1, 255(ignore)}; float or uint8 dtype accepted."""
    x = inputs.reshape(-1)
    t = targets.reshape(-1)
    n = x.shape[0]

    chunk = SUBLANES * LANES  # 1024: keeps rows a multiple of 8 so blocks fold onto (8,128)
    rem = n % chunk
    if rem:
        # TODO(synk): this tail pad copies the whole flat array (XLA pad); it is only taken
        # when numel % 1024 != 0.  Pad values are masked in-kernel by the element-index bound.
        pad = chunk - rem
        x = jnp.pad(x, (0, pad))
        t = jnp.pad(t, (0, pad))
    total_rows = x.shape[0] // LANES

    block_rows = min(MAX_BLOCK_ROWS, total_rows)      # both are multiples of 8
    num_blocks = pl.cdiv(total_rows, block_rows)
    steps_per_core = pl.cdiv(num_blocks, NUM_CORES)
    last_block = num_blocks - 1

    x2 = x.reshape(total_rows, LANES)                 # free reshape (contiguous, row-major)
    t2 = t.reshape(total_rows, LANES)

    def in_map(c, s):
        # A core may get a few dummy trailing steps; their data is fully masked in-kernel,
        # the clamp just keeps the DMA window in bounds.
        return (jnp.minimum(c * steps_per_core + s, last_block), 0)

    kernel = functools.partial(
        _focal_kernel,
        block_rows=block_rows,
        steps_per_core=steps_per_core,
        n_valid=n,
    )

    partials = pl.pallas_call(
        kernel,
        out_shape=jax.ShapeDtypeStruct((NUM_CORES, 3, SUBLANES, LANES), jnp.float32),
        grid_spec=pltpu.PrefetchScalarGridSpec(
            num_scalar_prefetch=0,
            grid=(NUM_CORES, steps_per_core),
            in_specs=[
                pl.BlockSpec((block_rows, LANES), in_map),
                pl.BlockSpec((block_rows, LANES), in_map),
            ],
            out_specs=pl.BlockSpec((1, 3, SUBLANES, LANES), lambda c, s: (c, 0, 0, 0)),
        ),
        compiler_params=pltpu.CompilerParams(
            dimension_semantics=("parallel", "arbitrary"),
            vmem_limit_bytes=32 * 1024 * 1024,
        ),
    )(x2, t2)

    # Tiny final combine in the wrapper (also merges the per-core partials on v7x).
    sums = jnp.sum(partials, axis=(0, 2, 3))          # [sum_bce, sum_alpha, valid_count]
    cnt = sums[2]                                     # NaN if no valid elems (same as torch)
    bce_mean = sums[0] / cnt
    at_mean = sums[1] / cnt
    pt = jnp.exp(-bce_mean)
    return at_mean * (1.0 - pt) ** GAMMA * bce_mean


def reference_loss(inputs, targets):
    """Pure-JAX reference matching the PyTorch forward exactly."""
    p = inputs.reshape(-1).astype(jnp.float32)
    t = targets.reshape(-1).astype(jnp.float32)
    mask = (t >= 0.0) & (t != IGNORE_LABEL)
    cnt = jnp.sum(mask.astype(jnp.float32))
    logp = jnp.maximum(jnp.log(p), -100.0)
    log1mp = jnp.maximum(jnp.log(1.0 - p), -100.0)
    bce = -(t * logp + (1.0 - t) * log1mp)
    bce_mean = jnp.sum(jnp.where(mask, bce, 0.0)) / cnt
    at = jnp.where(t > 0.5, 1.0 - ALPHA, ALPHA)
    at_mean = jnp.sum(jnp.where(mask, at, 0.0)) / cnt
    pt = jnp.exp(-bce_mean)
    return at_mean * (1.0 - pt) ** GAMMA * bce_mean


if __name__ == "__main__":
    key = jax.random.PRNGKey(0)
    loss_fn = jax.jit(weighted_focal_loss)

    test_shapes = [
        (2, 4, 16, 16),    # numel % 1024 == 0 -> zero-copy wrapper path
        (2, 3, 17, 19),    # ragged numel -> tail pad + in-kernel tail mask
        (2, 8, 200, 200),  # multiple blocks per core + partial last block
    ]
    for idx, shape in enumerate(test_shapes):
        k1, k2, k3 = jax.random.split(jax.random.fold_in(key, idx), 3)
        logits = jax.random.normal(k1, shape, dtype=jnp.float32)
        inputs = jax.nn.sigmoid(logits)                       # probabilities in (0,1)
        targets = jax.random.bernoulli(k2, 0.3, shape).astype(jnp.float32)
        ignore = jax.random.bernoulli(k3, 0.1, shape)         # ~10% ignored pixels
        targets = jnp.where(ignore, IGNORE_LABEL, targets)

        loss = jax.block_until_ready(loss_fn(inputs, targets))
        ref = reference_loss(inputs, targets)
        assert jnp.allclose(loss, ref, rtol=1e-4, atol=1e-6), (shape, loss, ref)

    # uint8 targets (0/1, ignore=255): narrow dtype is consumed directly by the kernel
    # (4x less target HBM traffic); cast to f32 happens in-kernel.
    shape = (2, 4, 16, 16)
    k1, k2, k3 = jax.random.split(jax.random.fold_in(key, 100), 3)
    inputs = jax.nn.sigmoid(jax.random.normal(k1, shape, dtype=jnp.float32))
    t_u8 = jax.random.bernoulli(k2, 0.3, shape).astype(jnp.uint8)
    t_u8 = jnp.where(jax.random.bernoulli(k3, 0.1, shape), jnp.uint8(255), t_u8)
    loss = jax.block_until_ready(loss_fn(inputs, t_u8))
    ref = reference_loss(inputs, t_u8)
    assert jnp.allclose(loss, ref, rtol=1e-4, atol=1e-6), (loss, ref)

    print("KERNEL_OK")
</pallas_src>

<mosaic_0001>
module attributes {stable_mosaic.version = 11 : i64} {
  func.func @_focal_kernel(%arg0: i32, %arg1: i32, %arg2: memref<16x128xf32, #tpu.memory_space<vmem>>, %arg3: memref<16x128xf32, #tpu.memory_space<vmem>>, %arg4: memref<1x3x8x128xf32, #tpu.memory_space<vmem>>) attributes {dimension_semantics = [#tpu.dimension_semantics<parallel>, #tpu.dimension_semantics<arbitrary>], iteration_bounds = array<i64: 2, 1>, scalar_prefetch = 0 : i64, scratch_operands = 0 : i64, tpu.core_type = #tpu.core_type<tc>, window_params = [{transform_indices = @transform_0, window_bounds = array<i64: 16, 128>}, {transform_indices = @transform_1, window_bounds = array<i64: 16, 128>}, {transform_indices = @transform_2, window_bounds = array<i64: 1, 3, 8, 128>}]} {
    %c0_i32 = arith.constant 0 : i32
    %0 = arith.cmpi eq, %arg1, %c0_i32 : i32
    %1 = arith.extui %0 : i1 to i32
    %c0_i32_0 = arith.constant 0 : i32
    %2 = arith.cmpi ne, %1, %c0_i32_0 : i32
    scf.if %2 {
      %cst_41 = arith.constant 0.000000e+00 : f32
      %69 = vector.broadcast %cst_41 : f32 to vector<1x3x8x128xf32>
      %c0_42 = arith.constant 0 : index
      %c0_43 = arith.constant 0 : index
      %c0_44 = arith.constant 0 : index
      %c0_45 = arith.constant 0 : index
      %70 = vector.load %arg4[%c0_42, %c0_43, %c0_44, %c0_45] : memref<1x3x8x128xf32, #tpu.memory_space<vmem>>, vector<1x3x8x128xf32>
      tpu.vector_store %arg4[%c0_42, %c0_43, %c0_44, %c0_45], %69 {strides = array<i32>} : memref<1x3x8x128xf32, #tpu.memory_space<vmem>>, vector<1x3x8x128xf32>,
    } else {
    }
    %c0 = arith.constant 0 : index
    %c0_1 = arith.constant 0 : index
    %3 = vector.load %arg2[%c0, %c0_1] : memref<16x128xf32, #tpu.memory_space<vmem>>, vector<16x128xf32>
    %c0_2 = arith.constant 0 : index
    %c0_3 = arith.constant 0 : index
    %4 = vector.load %arg3[%c0_2, %c0_3] : memref<16x128xf32, #tpu.memory_space<vmem>>, vector<16x128xf32>
    %c1_i32 = arith.constant 1 : i32
    %5 = arith.muli %arg0, %c1_i32 : i32
    %6 = arith.addi %5, %arg1 : i32
    %c16_i32 = arith.constant 16 : i32
    %7 = arith.muli %6, %c16_i32 : i32
    %8 = tpu.iota {dimensions = array<i32: 0>} : vector<16x128xi32>
    %9 = vector.broadcast %7 : i32 to vector<16x128xi32>
    %10 = arith.addi %9, %8 : vector<16x128xi32>
    %c16_i32_4 = arith.constant 16 : i32
    %11 = vector.broadcast %c16_i32_4 : i32 to vector<16x128xi32>
    %12 = arith.cmpi slt, %10, %11 : vector<16x128xi32>
    %cst = arith.constant 0.000000e+00 : f32
    %13 = vector.broadcast %cst : f32 to vector<16x128xf32>
    %14 = arith.cmpf oge, %4, %13 : vector<16x128xf32>
    %15 = arith.andi %12, %14 : vector<16x128xi1>
    %cst_5 = arith.constant 2.550000e+02 : f32
    %16 = vector.broadcast %cst_5 : f32 to vector<16x128xf32>
    %17 = arith.cmpf one, %4, %16 : vector<16x128xf32>
    %18 = arith.andi %15, %17 : vector<16x128xi1>
    %19 = math.log %3 : vector<16x128xf32>
    %cst_6 = arith.constant -1.000000e+02 : f32
    %20 = vector.broadcast %cst_6 : f32 to vector<16x128xf32>
    %21 = arith.maximumf %19, %20 : vector<16x128xf32>
    %cst_7 = arith.constant 1.000000e+00 : f32
    %22 = vector.broadcast %cst_7 : f32 to vector<16x128xf32>
    %23 = arith.subf %22, %3 : vector<16x128xf32>
    %24 = math.log %23 : vector<16x128xf32>
    %cst_8 = arith.constant -1.000000e+02 : f32
    %25 = vector.broadcast %cst_8 : f32 to vector<16x128xf32>
    %26 = arith.maximumf %24, %25 : vector<16x128xf32>
    %27 = arith.mulf %4, %21 : vector<16x128xf32>
    %cst_9 = arith.constant 1.000000e+00 : f32
    %28 = vector.broadcast %cst_9 : f32 to vector<16x128xf32>
    %29 = arith.subf %28, %4 : vector<16x128xf32>
    %30 = arith.mulf %29, %26 : vector<16x128xf32>
    %31 = arith.addf %27, %30 : vector<16x128xf32>
    %cst_10 = arith.constant 0.000000e+00 : f32
    %32 = vector.broadcast %cst_10 : f32 to vector<16x128xf32>
    %33 = arith.subf %32, %31 : vector<16x128xf32>
    %cst_11 = arith.constant 0.000000e+00 : f32
    %34 = vector.broadcast %cst_11 : f32 to vector<16x128xf32>
    %35 = arith.select %18, %33, %34 : vector<16x128xi1>, vector<16x128xf32>
    %cst_12 = arith.constant 5.000000e-01 : f32
    %36 = vector.broadcast %cst_12 : f32 to vector<16x128xf32>
    %37 = arith.cmpf ogt, %4, %36 : vector<16x128xf32>
    %cst_13 = arith.constant 7.500000e-01 : f32
    %cst_14 = arith.constant 2.500000e-01 : f32
    %38 = vector.broadcast %cst_13 : f32 to vector<16x128xf32>
    %39 = vector.broadcast %cst_14 : f32 to vector<16x128xf32>
    %40 = arith.select %37, %38, %39 : vector<16x128xi1>, vector<16x128xf32>
    %cst_15 = arith.constant 0.000000e+00 : f32
    %41 = vector.broadcast %cst_15 : f32 to vector<16x128xf32>
    %42 = arith.select %18, %40, %41 : vector<16x128xi1>, vector<16x128xf32>
    %43 = arith.extui %18 : vector<16x128xi1> to vector<16x128xi32>
    %44 = arith.sitofp %43 : vector<16x128xi32> to vector<16x128xf32>
    %c0_16 = arith.constant 0 : index
    %c0_17 = arith.constant 0 : index
    %c0_18 = arith.constant 0 : index
    %c0_19 = arith.constant 0 : index
    %45 = vector.load %arg4[%c0_16, %c0_17, %c0_18, %c0_19] : memref<1x3x8x128xf32, #tpu.memory_space<vmem>>, vector<1x1x8x128xf32>
    %46 = vector.shape_cast %45 : vector<1x1x8x128xf32> to vector<8x128xf32>
    %47 = vector.shape_cast %35 : vector<16x128xf32> to vector<2x8x128xf32>
    %cst_20 = arith.constant dense<0.000000e+00> : vector<8x128xf32>
    %48 = vector.multi_reduction <add>, %47, %cst_20 [0] : vector<2x8x128xf32> to vector<8x128xf32>
    %49 = arith.addf %46, %48 : vector<8x128xf32>
    %c0_21 = arith.constant 0 : index
    %c0_22 = arith.constant 0 : index
    %c0_23 = arith.constant 0 : index
    %c0_24 = arith.constant 0 : index
    %50 = vector.load %arg4[%c0_21, %c0_22, %c0_23, %c0_24] : memref<1x3x8x128xf32, #tpu.memory_space<vmem>>, vector<1x1x8x128xf32>
    %51 = vector.shape_cast %50 : vector<1x1x8x128xf32> to vector<8x128xf32>
    %52 = vector.shape_cast %49 : vector<8x128xf32> to vector<1x1x8x128xf32>
    tpu.vector_store %arg4[%c0_21, %c0_22, %c0_23, %c0_24], %52 {strides = array<i32>} : memref<1x3x8x128xf32, #tpu.memory_space<vmem>>, vector<1x1x8x128xf32>,
    %c0_25 = arith.constant 0 : index
    %c1 = arith.constant 1 : index
    %c0_26 = arith.constant 0 : index
    %c0_27 = arith.constant 0 : index
    %53 = vector.load %arg4[%c0_25, %c1, %c0_26, %c0_27] : memref<1x3x8x128xf32, #tpu.memory_space<vmem>>, vector<1x1x8x128xf32>
    %54 = vector.shape_cast %53 : vector<1x1x8x128xf32> to vector<8x128xf32>
    %55 = vector.shape_cast %42 : vector<16x128xf32> to vector<2x8x128xf32>
    %cst_28 = arith.constant dense<0.000000e+00> : vector<8x128xf32>
    %56 = vector.multi_reduction <add>, %55, %cst_28 [0] : vector<2x8x128xf32> to vector<8x128xf32>
    %57 = arith.addf %54, %56 : vector<8x128xf32>
    %c0_29 = arith.constant 0 : index
    %c1_30 = arith.constant 1 : index
    %c0_31 = arith.constant 0 : index
    %c0_32 = arith.constant 0 : index
    %58 = vector.load %arg4[%c0_29, %c1_30, %c0_31, %c0_32] : memref<1x3x8x128xf32, #tpu.memory_space<vmem>>, vector<1x1x8x128xf32>
    %59 = vector.shape_cast %58 : vector<1x1x8x128xf32> to vector<8x128xf32>
    %60 = vector.shape_cast %57 : vector<8x128xf32> to vector<1x1x8x128xf32>
    tpu.vector_store %arg4[%c0_29, %c1_30, %c0_31, %c0_32], %60 {strides = array<i32>} : memref<1x3x8x128xf32, #tpu.memory_space<vmem>>, vector<1x1x8x128xf32>,
    %c0_33 = arith.constant 0 : index
    %c2 = arith.constant 2 : index
    %c0_34 = arith.constant 0 : index
    %c0_35 = arith.constant 0 : index
    %61 = vector.load %arg4[%c0_33, %c2, %c0_34, %c0_35] : memref<1x3x8x128xf32, #tpu.memory_space<vmem>>, vector<1x1x8x128xf32>
    %62 = vector.shape_cast %61 : vector<1x1x8x128xf32> to vector<8x128xf32>
    %63 = vector.shape_cast %44 : vector<16x128xf32> to vector<2x8x128xf32>
    %cst_36 = arith.constant dense<0.000000e+00> : vector<8x128xf32>
    %64 = vector.multi_reduction <add>, %63, %cst_36 [0] : vector<2x8x128xf32> to vector<8x128xf32>
    %65 = arith.addf %62, %64 : vector<8x128xf32>
    %c0_37 = arith.constant 0 : index
    %c2_38 = arith.constant 2 : index
    %c0_39 = arith.constant 0 : index
    %c0_40 = arith.constant 0 : index
    %66 = vector.load %arg4[%c0_37, %c2_38, %c0_39, %c0_40] : memref<1x3x8x128xf32, #tpu.memory_space<vmem>>, vector<1x1x8x128xf32>
    %67 = vector.shape_cast %66 : vector<1x1x8x128xf32> to vector<8x128xf32>
    %68 = vector.shape_cast %65 : vector<8x128xf32> to vector<1x1x8x128xf32>
    tpu.vector_store %arg4[%c0_37, %c2_38, %c0_39, %c0_40], %68 {strides = array<i32>} : memref<1x3x8x128xf32, #tpu.memory_space<vmem>>, vector<1x1x8x128xf32>,
    return
  }
  func.func @transform_0(%arg0: i32, %arg1: i32) -> (i32, i32) {
    %c1_i32 = arith.constant 1 : i32
    %0 = arith.muli %arg0, %c1_i32 : i32
    %1 = arith.addi %0, %arg1 : i32
    %c0_i32 = arith.constant 0 : i32
    %2 = arith.minsi %1, %c0_i32 : i32
    %c0_i32_0 = arith.constant 0 : i32
    %c0_i32_1 = arith.constant 0 : i32
    return %2, %c0_i32_0 : i32, i32
  }
  func.func @transform_1(%arg0: i32, %arg1: i32) -> (i32, i32) {
    %c1_i32 = arith.constant 1 : i32
    %0 = arith.muli %arg0, %c1_i32 : i32
    %1 = arith.addi %0, %arg1 : i32
    %c0_i32 = arith.constant 0 : i32
    %2 = arith.minsi %1, %c0_i32 : i32
    %c0_i32_0 = arith.constant 0 : i32
    %c0_i32_1 = arith.constant 0 : i32
    return %2, %c0_i32_0 : i32, i32
  }
  func.func @transform_2(%arg0: i32, %arg1: i32) -> (i32, i32, i32, i32) {
    %c0_i32 = arith.constant 0 : i32
    %c0_i32_0 = arith.constant 0 : i32
    %c0_i32_1 = arith.constant 0 : i32
    %c0_i32_2 = arith.constant 0 : i32
    return %arg0, %c0_i32, %c0_i32_0, %c0_i32_1 : i32, i32, i32, i32
  }
}

</mosaic_0001>

<bundles_post_ra>
// kernel: weighted_focal_loss.1
= control target key start
LH: loop header
LB: loop body
LE: loop exit
PB: predicated region body
PF: predicated region fallthrough
CT: control target
= control target key end

     0   :  { %s471_s9 = smov 0   ;;  %s473_s10 = smov 0   ;;  %s530_s0 = inlined_call_operand.vmem [shape: f32[16,128], index: 0, kind: input, shape index: {}]   ;;  %s531_s1 = inlined_call_operand.vmem [shape: f32[16,128], index: 1, kind: input, shape index: {}]   ;;  %s532_s2 = inlined_call_operand.vmem [shape: f32[2,3,8,128], index: 2, kind: output, shape index: {}]  }
   0x1   :  { %s475_s11 = smov 0  }
   0x2 LB: > { %s24_s12 = sadd.s32 1, %s448_s10  ;;  %p380_p0 = scmp.ge.s32.totalorder %s452_s11, 1  ;;  %s452_s11 = sphi %s475_s11, %s12_s11   ;;  %s448_s10 = sphi %s473_s10, %s538_s10   ;;  %s444_s9 = sphi %s471_s9, %s537_s9  }
   0x3   : > { %p26_p1 = scmp.ge.s32.totalorder %s24_s12, 2  ;;  %p160_p2 = scmp.lt.s32.totalorder %s452_s11, 3 }
   0x5   : > { %s540_s12 = smov (%p26_p1, %s24_s12), 0  ;;  %p161_p3 = pnand %p380_p0, %p160_p2 }
   0x6   : > { %p194_p4 = scmp.lt.s32.totalorder (!%p161_p3), %s444_s9, 0  ;;  %v235_v0 = vlaneseq (!%p161_p3)  ;;  %s386_s13 = sshll.u32 (!%p161_p3), %s444_s9, 4  ;;  %v454_v13 = vmov (!%p161_p3), 0.25   ;;  %v455_v18 = vmov (!%p161_p3), 0.0  }
   0x7   : > { %164 = sbr.rel (%p161_p3) target bundleno = 52 (0x34), region = 28  ;;  %v238_v3 = vstv (!%p161_p3), %s386_s13  ;;  %p217_p6 = scmp.lt.s32.totalorder (!%p161_p3), %s444_s9, 1 }
   0x8   : > { %v236_v1 = vshrl.u32 (!%p161_p3), %v235_v0, 7 }
   0xa   : > { %v237_v2 = vadd.s32 (!%p161_p3), 8, %v236_v1  ;;  %v239_v4 = vadd.s32 (!%p161_p3), %v238_v3, %v236_v1 }
   0xc   : > { %v240_v5 = vadd.s32 (!%p161_p3), %v238_v3, %v237_v2  ;;  %vm241_vm0 = vcmp.lt.s32.totalorder (!%p161_p3), %v239_v4, 16 }
   0xe   : > { %s195_s14 = scalar_select %p194_p4, %s444_s9, 0  ;;  %vm242_vm1 = vcmp.lt.s32.totalorder %v240_v5, 16 }
   0xf   : > { %s544_s9 = smov (!%p217_p6, %s444_s9), 1 }
  0x10   : > { %s381_s15 = sshll.u32 %s195_s14, 1  ;;  %s395_s23 = smul.u32 24, %s544_s9 }
  0x11   : > { %p197_p5 = scmp.lt.s32.totalorder %s381_s15, 1 }
  0x12   : > { %s221_s26 = scalar_lea.vmem %s532_s2, %s395_s23 }
  0x13   : > { %s542_s15 = smov (!%p197_p5, %s381_s15), 1 }
  0x14   : > { %s382_s16 = sshll.u32 %s542_s15, 3 }
  0x15   : > { %s200_s19 = scalar_lea.vmem %s530_s0, %s382_s16  ;;  %s212_s22 = scalar_lea.vmem %s531_s1, %s382_s16 }
  0x16   : > { %v229_v6 = vld [vmem:[%s200_s19] sm:$0xff]  ;;  %v230_v7 = vld [vmem:[%s200_s19 + $0x8] sm:$0xff] }
  0x17   : > { %v231_v8 = vld [vmem:[%s212_s22] sm:$0xff]  ;;  %v232_v9 = vld [vmem:[%s212_s22 + $0x8] sm:$0xff]  ;;  %422 = vlog2.f32 %v229_v6  ;;  %v257_v10 = vsub.f32 1.0, %v229_v6  ;;  %v258_v11 = vsub.f32 1.0, %v230_v7 }
  0x18   : > { %vm243_vm2 = vcmp.ge.f32.partialorder %v231_v8, 0.0  ;;  %vm247_vm3 = vcmp.ne.f32.partialorder %v231_v8, 255.0  ;;  %vm244_vm4 = vcmp.ge.f32.partialorder %v232_v9, 0.0  ;;  %vm248_vm6 = vcmp.ne.f32.partialorder %v232_v9, 255.0 }
  0x19   : > { %vm245_vm5 = vmand %vm241_vm0, %vm243_vm2  ;;  %424 = vlog2.f32 %v230_v7  ;;  %vm277_vm8 = vcmp.gt.f32.partialorder %v231_v8, 0.5  ;;  %vm278_vm10 = vcmp.gt.f32.partialorder %v232_v9, 0.5  ;;  %v267_v32 = vsub.f32 1.0, %v231_v8 }
  0x1a   : > { %vm246_vm7 = vmand %vm242_vm1, %vm244_vm4  ;;  %426 = vlog2.f32 %v257_v10  ;;  %v279_v14 = vsel %vm277_vm8, 0.75, %v454_v13  ;;  %v280_v16 = vsel %vm278_vm10, 0.75, %v454_v13  ;;  %v268_v35 = vsub.f32 1.0, %v232_v9 }
  0x1b   : > { %vm498_vm9 = vmand %vm245_vm5, %vm247_vm3  ;;  %428 = vlog2.f32 %v258_v11 }
  0x1c   : > { %vm502_vm11 = vmand %vm246_vm7, %vm248_vm6  ;;  %v281_v17 = vsel %vm498_vm9, %v279_v14, 0.0  ;;  %v387_v19 = vsel %vm498_vm9, 1.0, %v455_v18 }
  0x1d   : > { %v282_v20 = vsel %vm502_vm11, %v280_v16, 0.0  ;;  %v388_v21 = vsel %vm502_vm11, 1.0, %v455_v18 }
  0x1e   : > { %v293_v22 = vadd.f32 %v282_v20, %v281_v17  ;;  %v298_v23 = vadd.f32 %v388_v21, %v387_v19 }
  0x20   : > { %390 = vst [vmem:[%s221_s26 + $0x8] sm:$0xff] %v293_v22  ;;  %392 = vst [vmem:[%s221_s26 + $0x10] sm:$0xff] %v298_v23 }
  0x21   : > { %v423_v24 = vpop.eup %422 }
  0x22   : > { %v252_v26 = vmul.f32 0.6931472, %v423_v24 }
  0x23   : > { %v425_v25 = vpop.eup %424 }
  0x24   : > { %v427_v27 = vpop.eup %426  ;;  %v254_v28 = vmul.f32 0.6931472, %v425_v25  ;;  %v255_v30 = vmax.f32 %v252_v26, -100.0 }
  0x25   : > { %v429_v29 = vpop.eup %428  ;;  %v260_v31 = vmul.f32 0.6931472, %v427_v27 }
  0x26   : > { %v256_v33 = vmax.f32 %v254_v28, -100.0  ;;  %v262_v34 = vmul.f32 0.6931472, %v429_v29  ;;  %v265_v37 = vmul.f32 %v255_v30, %v231_v8 }
  0x27   : > { %v263_v36 = vmax.f32 %v260_v31, -100.0 }
  0x28   : > { %v264_v38 = vmax.f32 %v262_v34, -100.0  ;;  %v266_v39 = vmul.f32 %v256_v33, %v232_v9 }
  0x29   : > { %v269_v40 = vmul.f32 %v267_v32, %v263_v36 }
  0x2a   : > { %v270_v41 = vmul.f32 %v268_v35, %v264_v38 }
  0x2b   : > { %v271_v42 = vadd.f32 %v269_v40, %v265_v37 }
  0x2c   : > { %v272_v43 = vadd.f32 %v270_v41, %v266_v39 }
  0x2d   : > { %v273_v44 = vsub.f32 0.0, %v271_v42 }
  0x2e   : > { %v274_v45 = vsub.f32 0.0, %v272_v43 }
  0x2f   : > { %v275_v46 = vsel %vm498_vm9, %v273_v44, 0.0 }
  0x30   : > { %v276_v47 = vsel %vm502_vm11, %v274_v45, 0.0 }
  0x31   : > { %v288_v48 = vadd.f32 %v276_v47, %v275_v46 }
  0x33   : > { %290 = vst [vmem:[%s221_s26] sm:$0xff] %v288_v48 }
  0x34 PF: > { %s12_s11 = sadd.s32 1, %s452_s11   ;;  %s537_s9 = smov %s448_s10 }
  0x35   : > { %p9_p7 = scmp.ge.s32.totalorder %s12_s11, 4   ;;  %s538_s10 = smov %s540_s12 }
  0x37   :  { %11 = sbr.rel (!%p9_p7) target bundleno = 2 (0x2), region = 67 }

</bundles_post_ra>
